<compile_context>
chip_gen: v7x
topology: tpu7x:2x2x1
jax: 0.10.0
libtpu: 0.0.40
codegen_flags: <defaults>
</compile_context>

<pallas_src>
import numpy as np

import jax
import jax.numpy as jnp
from jax.experimental import pallas as pl
from jax.experimental.pallas import tpu as pltpu


# --------------------------------------------------------------------------
# Parameter construction (mirrors PositionalEncoding.__init__ exactly)
# --------------------------------------------------------------------------
def make_position_encoding_table(d_model: int, max_seq_len: int) -> jnp.ndarray:
    pe = np.array(
        [[pos / np.power(10000, 2.0 * (j // 2) / d_model) for j in range(d_model)]
         for pos in range(max_seq_len)],
        dtype=np.float64,
    )
    pe[:, 0::2] = np.sin(pe[:, 0::2])
    pe[:, 1::2] = np.cos(pe[:, 1::2])
    pe = pe.astype(np.float32)
    pad_row = np.zeros((1, d_model), dtype=np.float32)
    table = np.concatenate([pad_row, pe], axis=0)          # (max_seq_len + 1, d_model)
    return jnp.asarray(table)


# --------------------------------------------------------------------------
# Pallas kernel: embedding lookup of input_pos, broadcast over batch
# --------------------------------------------------------------------------
def _pos_embed_kernel(pos_ref, pe_ref, out_ref):
    # pos_ref : SMEM (batch, seq) int32 -- the module's input_pos tensor.
    # pe_ref  : VMEM (max_seq_len+1, d_pad) float32 -- padded PE table.
    # out_ref : VMEM (batch, seq, d_pad) float32.
    _, seq, _ = out_ref.shape
    # input_pos rows are the contiguous range [1 .. seq]; the embedding lookup is
    # therefore a contiguous slice of the table starting at the (dynamic) first
    # index.  TODO(synk): a general (non-contiguous) index tensor would need a
    # per-row gather; the reference forward never produces one.
    start = pos_ref[0, 0]
    rows = pe_ref[pl.ds(start, seq), :]                     # (seq, d_pad)
    out_ref[...] = jnp.broadcast_to(rows[None, :, :], out_ref.shape)


def positional_encoding_forward(pe_table: jnp.ndarray, batch_len: int, seq_len: int):
    """Equivalent of PositionalEncoding.forward(batch_len, seq_len)."""
    max_rows, d_model = pe_table.shape
    assert seq_len <= max_rows - 1

    # Lane-dense feature dim: pad d_model up to a multiple of 128, slice back after.
    d_pad = ((d_model + 127) // 128) * 128
    if d_pad != d_model:
        pe_padded = jnp.pad(pe_table, ((0, 0), (0, d_pad - d_model)))
    else:
        pe_padded = pe_table

    # input_pos = [[1, ..., seq_len]] * batch_len   (as in the PyTorch forward)
    input_pos = jnp.broadcast_to(
        jnp.arange(1, seq_len + 1, dtype=jnp.int32), (batch_len, seq_len)
    )

    out = pl.pallas_call(
        _pos_embed_kernel,
        out_shape=jax.ShapeDtypeStruct((batch_len, seq_len, d_pad), jnp.float32),
        grid_spec=pltpu.PrefetchScalarGridSpec(
            num_scalar_prefetch=1,
            grid=(1,),
            in_specs=[pl.BlockSpec((max_rows, d_pad), lambda i, pos: (0, 0))],
            out_specs=pl.BlockSpec(
                (batch_len, seq_len, d_pad), lambda i, pos: (0, 0, 0)
            ),
        ),
        compiler_params=pltpu.CompilerParams(dimension_semantics=("arbitrary",)),
    )(input_pos, pe_padded)

    return out[..., :d_model]


# --------------------------------------------------------------------------
# Demo / self-check
# --------------------------------------------------------------------------
if __name__ == "__main__":
    _ = jax.random.PRNGKey(0)  # forward takes only scalars; the PE table is deterministic.

    d_model = 64
    max_seq_len = 16
    batch_len = 2
    seq_len = 8

    table = make_position_encoding_table(d_model, max_seq_len)

    fwd = jax.jit(positional_encoding_forward, static_argnums=(1, 2))
    out = fwd(table, batch_len, seq_len)
    out = jax.block_until_ready(out)

    # Reference: embedding lookup of positions 1..seq_len, broadcast over batch.
    ref = jnp.broadcast_to(table[1:seq_len + 1][None, :, :],
                           (batch_len, seq_len, d_model))

    assert out.shape == (batch_len, seq_len, d_model)
    assert out.dtype == jnp.float32
    assert bool(jnp.all(jnp.isfinite(out)))
    assert bool(jnp.allclose(out, ref, rtol=1e-6, atol=1e-6))
    print("KERNEL_OK")
</pallas_src>

<mosaic_0001>
module attributes {stable_mosaic.version = 11 : i64} {
  func.func @_pos_embed_kernel(%arg0: i32, %arg1: memref<2x8xi32, #tpu.memory_space<smem>>, %arg2: memref<17x128xf32, #tpu.memory_space<vmem>>, %arg3: memref<2x8x128xf32, #tpu.memory_space<vmem>>) attributes {dimension_semantics = [#tpu.dimension_semantics<arbitrary>], iteration_bounds = array<i64: 1>, scalar_prefetch = 1 : i64, scratch_operands = 0 : i64, tpu.core_type = #tpu.core_type<tc>, window_params = [{pipeline_mode = #tpu.pipeline_mode<synchronous>, transform_indices = @transform_0, window_bounds = array<i64: 17, 128>}, {pipeline_mode = #tpu.pipeline_mode<synchronous>, transform_indices = @transform_1, window_bounds = array<i64: 2, 8, 128>}]} {
    %c0 = arith.constant 0 : index
    %c0_0 = arith.constant 0 : index
    %0 = memref.load %arg1[%c0, %c0_0] : memref<2x8xi32, #tpu.memory_space<smem>>
    %1 = arith.index_cast %0 : i32 to index
    %c0_1 = arith.constant 0 : index
    %2 = vector.load %arg2[%1, %c0_1] : memref<17x128xf32, #tpu.memory_space<vmem>>, vector<8x128xf32>
    %3 = vector.shape_cast %2 : vector<8x128xf32> to vector<1x8x128xf32>
    %4 = vector.shape_cast %3 : vector<1x8x128xf32> to vector<1x8x128xf32>
    %5 = vector.broadcast %4 : vector<1x8x128xf32> to vector<2x8x128xf32>
    %c0_2 = arith.constant 0 : index
    %c0_3 = arith.constant 0 : index
    %c0_4 = arith.constant 0 : index
    %6 = vector.load %arg3[%c0_2, %c0_3, %c0_4] : memref<2x8x128xf32, #tpu.memory_space<vmem>>, vector<2x8x128xf32>
    tpu.vector_store %arg3[%c0_2, %c0_3, %c0_4], %5 {strides = array<i32>} : memref<2x8x128xf32, #tpu.memory_space<vmem>>, vector<2x8x128xf32>,
    return
  }
  func.func @transform_0(%arg0: i32, %arg1: memref<2x8xi32, #tpu.memory_space<smem>>) -> (i32, i32) {
    %c0_i32 = arith.constant 0 : i32
    %c0_i32_0 = arith.constant 0 : i32
    %c0_i32_1 = arith.constant 0 : i32
    return %c0_i32, %c0_i32_0 : i32, i32
  }
  func.func @transform_1(%arg0: i32, %arg1: memref<2x8xi32, #tpu.memory_space<smem>>) -> (i32, i32, i32) {
    %c0_i32 = arith.constant 0 : i32
    %c0_i32_0 = arith.constant 0 : i32
    %c0_i32_1 = arith.constant 0 : i32
    %c0_i32_2 = arith.constant 0 : i32
    return %c0_i32, %c0_i32_0, %c0_i32_1 : i32, i32, i32
  }
}

</mosaic_0001>

<bundles_post_ra>
// kernel: positional_encoding_forward.1
= control target key start
LH: loop header
LB: loop body
LE: loop exit
PB: predicated region body
PF: predicated region fallthrough
CT: control target
= control target key end

     0   :  { %s117_s0 = inlined_call_operand.vmem [shape: s32[2,8], index: 0, kind: input, shape index: {}]   ;;  %s118_s1 = inlined_call_operand.vmem [shape: f32[17,128], index: 1, kind: input, shape index: {}]   ;;  %s119_s2 = inlined_call_operand.hbm [shape: f32[2,8,128], index: 2, kind: output, shape index: {}]  }
   0x1   :  { %s7_s11 = sshll.u32 %s117_s0, 4  ;;  %s8_s11 = int_to_ptr.vmem [resolvable:$true] %s7_s11 }
   0x2   :  { %s42_s12 = scalar_lea.vmem %s8_s11, 32  ;;  %p47_p1 = scmp.lt.s32.totalorder %s8_s11, %s8_s11 }
   0x3   :  { %p43_p0 = scmp.ne.s32.totalorder %s8_s11, %s42_s12  ;;  %p48_p2 = scmp.lt.s32.totalorder %s42_s12, %s42_s12 }
   0x5   :  { %p49_p3 = por %p48_p2, %p47_p1 }
   0x7   :  { %p50_p4 = pnand %p49_p3, %p43_p0 }
   0x9   :  { %53 = shalt.err (!%p50_p4)  }
   0xa   :  { %s80_s13 = smov [#allocation3]  }
   0xb   :  { %10 = dma.vmem_to_smem %s8_s11, 32, %s80_s13, [#allocation2] }
   0xc   :  { %76 = dma.done.wait [#allocation2], 32 }
   0xd   :  { %77 = vsyncadd [#allocation2], 4294967264 }
   0xe   :  { %12 = sfence }
   0xf   :  { %s16_s14 = sld [smem:[#allocation3]] }
  0x10   :  { %13 = vsyncpa [#allocation5], 0  ;;  %s81_s15 = smov [#allocation4]  }
  0x11   :  { %s26_s16 = sshll.u32 %s81_s15, 4  ;;  %s27_s16 = int_to_ptr.vmem [resolvable:$true] %s26_s16 }
  0x12   :  { %s54_s19 = scalar_lea.vmem %s27_s16, 256  ;;  %p59_p6 = scmp.lt.s32.totalorder %s27_s16, %s27_s16 }
  0x13   :  { %p55_p5 = scmp.ne.s32.totalorder %s27_s16, %s54_s19  ;;  %p60_p7 = scmp.lt.s32.totalorder %s54_s19, %s54_s19 }
  0x15   :  { %s17_s18 = scalar_lea.vmem %s118_s1, %s16_s14  ;;  %p61_p8 = por %p60_p7, %p59_p6 }
  0x16   :  { %v18_v0 = vld [vmem:[%s17_s18] sm:$0xff] }
  0x17   :  { %19 = vst [vmem:[#allocation4] sm:$0xff] %v18_v0  ;;  %20 = vst [vmem:[#allocation4 + $0x8] sm:$0xff] %v18_v0  ;;  %p62_p9 = pnand %p61_p8, %p55_p5 }
  0x19   :  { %65 = shalt.err (!%p62_p9)
}
  0x1a   :  { %s66_s22 = scalar_lea.hbm %s119_s2, 256 }
  0x1b   :  { %p67_p10 = scmp.ne.s32.totalorder %s119_s2, %s66_s22  ;;  %p70_p11 = scmp.lt.u32.totalorder %s66_s22, %s119_s2 }
  0x1d   :  { %p72_p12 = pnand %p70_p11, %p67_p10 }
  0x1f   :  { %75 = shalt.err (!%p72_p12)
}
  0x20   :  { %s82_s26 = smov 128   ;;  %s83_s27 = smov 8  }
  0x21   :  { %32 = dma.vmem_to_hbm [thread:$0]  %s27_s16, 256, %s119_s2, [#allocation5], %s82_s26, %s82_s26, %s83_s27  }
  0x22   :  { %78 = dma.done.wait [#allocation5], 256  }
  0x23   :  { %79 = vsyncadd [#allocation5], 4294967040 }
  0x24   :  { %36 = vsyncpa [#allocation5], 1 }

</bundles_post_ra>
